<compile_context>
chip_gen: v6e
topology: v6e:2x2x1
jax: 0.10.0
libtpu: 0.0.40
codegen_flags: <defaults>
</compile_context>

<pallas_src>
import functools
import math

import jax
import jax.numpy as jnp
from jax.experimental import pallas as pl
from jax.experimental.pallas import tpu as pltpu


_E_MAX_BLOCK = 2 * 1024 * 1024   # hard cap on elements per logits block (8-16 MiB)


def _round_up(x, m):
    return (x + m - 1) // m * m


def _vmem_limit_bytes():
    """Generation-aware scoped-VMEM limit (75% of physical per-core VMEM)."""
    cap = None
    try:
        info = pltpu.get_tpu_info()
        cap = getattr(info, "vmem_capacity_bytes", None)
    except Exception:
        cap = None
    if not cap:
        cap = 64 * 1024 * 1024   # conservative fallback (v7x per-core VMEM)
    return int(cap) * 3 // 4     # ~96 MiB on v5e/v6e (128 MiB), ~48 MiB on v7x (64 MiB)


def _choose_tile_v(v_pad, cap):
    """Largest multiple-of-128 divisor of v_pad that is <= cap (v_pad % 128 == 0)."""
    cap = min(max(cap, 128), v_pad)
    cap -= cap % 128
    if v_pad <= cap:
        return v_pad
    for cand in range(cap, 127, -128):
        if v_pad % cand == 0:
            return cand
    return 128


def _label_smoothing_kernel(logits_ref, tgt_ref, xtgt_ref, loss_ref,
                            m_sc, s_sc, sumx_sc, *,
                            tile_v, n_classes, confidence, smoothing_value,
                            c_const, ignore_index, single_tile, has_tail):
    j = pl.program_id(1)   # vocab-tile index (reduction axis, "arbitrary", last)

    x = logits_ref[...]                                  # (R, TV) native dtype
    xf = x.astype(jnp.float32)                           # f32 stream for exp / sums

    # Block max in the native dtype (exact), promoted to f32 for the lse math.
    blk_max = jnp.max(x, axis=-1, keepdims=True).astype(jnp.float32)

    if has_tail:
        # Ragged vocab: padded tail columns hold finfo.min (harmless for max /
        # exp) but must be excluded from the plain row-sum.
        nvalid = jnp.int32(n_classes) - j * tile_v
        col = jax.lax.broadcasted_iota(jnp.int32, x.shape, 1)
        x_for_sum = jnp.where(col < nvalid, xf, jnp.float32(0.0))
    else:
        x_for_sum = xf
    blk_sumx = jnp.sum(x_for_sum, axis=-1, keepdims=True)

    def finalize(lse, sumx):
        tgt = tgt_ref[...]                               # (R, 1) int32
        logp_tgt = xtgt_ref[...] - lse                   # x[tgt] gathered in wrapper
        sum_logp = sumx - jnp.float32(n_classes) * lse
        row_loss = (jnp.float32(c_const)
                    - jnp.float32(smoothing_value) * sum_logp
                    - jnp.float32(confidence - smoothing_value) * logp_tgt)
        valid = tgt != jnp.int32(ignore_index)
        loss_ref[...] = jnp.where(valid, row_loss, jnp.float32(0.0))

    if single_tile:
        # Fast path: whole vocab in one block; no scratch, no online rescale.
        s = jnp.sum(jnp.exp(xf - blk_max), axis=-1, keepdims=True)
        finalize(jnp.log(s) + blk_max, blk_sumx)
    else:
        @pl.when(j == 0)
        def _():
            m_sc[...] = jnp.full_like(m_sc, -jnp.inf)
            s_sc[...] = jnp.zeros_like(s_sc)
            sumx_sc[...] = jnp.zeros_like(sumx_sc)

        # Online logsumexp accumulation over the vocab axis (f32).
        m_new = jnp.maximum(m_sc[...], blk_max)
        s_sc[...] = (s_sc[...] * jnp.exp(m_sc[...] - m_new)
                     + jnp.sum(jnp.exp(xf - m_new), axis=-1, keepdims=True))
        m_sc[...] = m_new
        sumx_sc[...] += blk_sumx

        @pl.when(j == pl.num_programs(1) - 1)
        def _():
            finalize(jnp.log(s_sc[...]) + m_sc[...], sumx_sc[...])


def label_smoothing_loss(logits, target, *, label_smoothing, tgt_vocab_size,
                         ignore_index=-100, reduction='none', tile_v_cap=8192):
    """Pallas implementation of LabelSmoothingLoss.forward.

    logits: (B, V) float (f32/bf16), target: (B,) int.
    Returns (loss, valid_mask). With reduction='none', `loss` is (B,) with zeros
    at ignored rows; 'mean'/'sum' reduce over valid rows only (matching PyTorch).
    """
    assert 0.0 < label_smoothing <= 1.0
    B, V = logits.shape
    assert V == tgt_vocab_size
    smoothing_value = label_smoothing / (tgt_vocab_size - 1)
    confidence = 1.0 - label_smoothing
    # C = sum_v q_v*log(q_v), compile-time constant (0*log0 := 0 when confidence == 0).
    c_const = (tgt_vocab_size - 1) * smoothing_value * math.log(smoothing_value)
    if confidence > 0.0:
        c_const += confidence * math.log(confidence)

    itemsize = jnp.dtype(logits.dtype).itemsize
    row_align = 16 if itemsize < 4 else 8   # bf16 sublane packing

    # ---- block sizing from the generation-aware VMEM budget -------------------
    vmem_limit = _vmem_limit_bytes()
    # Per-element VMEM accounting: double-buffered native input block plus ~4
    # f32-block-sized in-kernel temporaries (upcast / exp / masked copy) - conservative.
    per_elem = 2 * itemsize + 16
    e_cap = max(row_align * 128,
                min(_E_MAX_BLOCK, (vmem_limit - (2 << 20)) // per_elem))

    v_padded = _round_up(V, 128)
    has_tail = v_padded != V
    tile_v = _choose_tile_v(v_padded, min(tile_v_cap, e_cap // row_align))
    num_v = v_padded // tile_v
    single_tile = num_v == 1

    # Row tile: as large as the element budget allows, but keep >=2 grid steps
    # along the "parallel" batch axis when possible (megacore split).
    b_pad_min = _round_up(B, row_align)
    row_cap = max(row_align, (e_cap // tile_v) // row_align * row_align)
    row_tile = min(row_cap, b_pad_min)
    if b_pad_min > row_align and pl.cdiv(b_pad_min, row_tile) < 2:
        row_tile = max(row_align, _round_up(pl.cdiv(b_pad_min, 2), row_align))
    b_padded = _round_up(B, row_tile)

    # ---- O(B) wrapper-side pieces ---------------------------------------------
    tgt_i32 = target.astype(jnp.int32)
    valid = tgt_i32 != ignore_index
    safe_tgt = jnp.clip(jnp.where(valid, tgt_i32, 0), 0, V - 1)
    # x[tgt] pick: tiny gather (B values) kept out of the streaming kernel.
    xtgt2d = jnp.take_along_axis(logits, safe_tgt[:, None], axis=1).astype(jnp.float32)
    tgt2d = tgt_i32.reshape(B, 1)

    x_in = logits
    if v_padded != V:
        # Pad tail columns with a huge negative -> exp/max unaffected; the plain
        # row-sum masks them in-kernel (has_tail path).
        neg = float(jnp.finfo(logits.dtype).min)
        x_in = jnp.pad(x_in, ((0, 0), (0, v_padded - V)), constant_values=neg)
    if b_padded != B:
        x_in = jnp.pad(x_in, ((0, b_padded - B), (0, 0)))
        tgt2d = jnp.pad(tgt2d, ((0, b_padded - B), (0, 0)),
                        constant_values=ignore_index)
        xtgt2d = jnp.pad(xtgt2d, ((0, b_padded - B), (0, 0)))

    # ---- pallas_call -----------------------------------------------------------
    kernel = functools.partial(
        _label_smoothing_kernel,
        tile_v=tile_v, n_classes=V,
        confidence=confidence, smoothing_value=smoothing_value,
        c_const=c_const, ignore_index=ignore_index,
        single_tile=single_tile, has_tail=has_tail)

    grid = (b_padded // row_tile, num_v)
    cost = pl.CostEstimate(
        flops=6 * b_padded * v_padded,
        transcendentals=b_padded * v_padded,
        bytes_accessed=b_padded * v_padded * itemsize + b_padded * 16)

    # TODO(synk): the (row_tile, 1) output block lowers to masked lane stores; a
    # lane-dense output would need an in-kernel transpose (output bytes <0.2% of traffic).
    loss2d = pl.pallas_call(
        kernel,
        out_shape=jax.ShapeDtypeStruct((b_padded, 1), jnp.float32),
        grid_spec=pltpu.PrefetchScalarGridSpec(
            num_scalar_prefetch=0,
            grid=grid,
            in_specs=[
                pl.BlockSpec((row_tile, tile_v), lambda i, j: (i, j)),
                pl.BlockSpec((row_tile, 1), lambda i, j: (i, 0)),
                pl.BlockSpec((row_tile, 1), lambda i, j: (i, 0)),
            ],
            out_specs=pl.BlockSpec((row_tile, 1), lambda i, j: (i, 0)),
            scratch_shapes=[pltpu.VMEM((row_tile, 1), jnp.float32)] * 3,
        ),
        compiler_params=pltpu.CompilerParams(
            dimension_semantics=("parallel", "arbitrary"),
            vmem_limit_bytes=vmem_limit),
        cost_estimate=cost,
    )(x_in, tgt2d, xtgt2d)   # native dtype streamed; upcast happens in-kernel

    loss = loss2d[:B, 0]

    if reduction == 'none':
        return loss, valid
    elif reduction == 'sum':
        return jnp.sum(loss), valid
    elif reduction == 'mean':
        n_valid = jnp.maximum(jnp.sum(valid.astype(jnp.float32)), 1.0)
        return jnp.sum(loss) / n_valid, valid
    else:
        raise ValueError(reduction)


def _reference(logits, target, *, label_smoothing, tgt_vocab_size, ignore_index):
    """Pure-JAX reference (masked dense form) for verification."""
    smoothing_value = label_smoothing / (tgt_vocab_size - 1)
    confidence = 1.0 - label_smoothing
    logp = jax.nn.log_softmax(logits.astype(jnp.float32), axis=-1)
    col = jnp.arange(tgt_vocab_size)[None, :]
    q = jnp.where(col == target[:, None], confidence, smoothing_value)
    term = jnp.where(q > 0, q * (jnp.log(jnp.maximum(q, 1e-30)) - logp), 0.0)
    loss = jnp.sum(term, axis=-1)
    return jnp.where(target != ignore_index, loss, 0.0)


if __name__ == "__main__":
    key = jax.random.PRNGKey(0)
    label_smoothing = 0.1
    ignore_index = -100

    # --- Test 1: f32 logits, single vocab tile (fast path) ---
    B, V = 8, 512
    k1, k2 = jax.random.split(key)
    logits = jax.random.normal(k1, (B, V), dtype=jnp.float32)
    target = jax.random.randint(k2, (B,), 0, V, dtype=jnp.int32)
    target = target.at[1].set(ignore_index).at[5].set(ignore_index)

    loss, valid = label_smoothing_loss(
        logits, target,
        label_smoothing=label_smoothing, tgt_vocab_size=V,
        ignore_index=ignore_index, reduction='none')
    loss = jax.block_until_ready(loss)
    ref = _reference(logits, target, label_smoothing=label_smoothing,
                     tgt_vocab_size=V, ignore_index=ignore_index)
    assert jnp.allclose(loss, ref, atol=1e-4, rtol=1e-4), (loss, ref)

    # --- Test 2: bf16 logits, forced vocab tiling (online-lse path) ---
    B2, V2 = 16, 512
    k3, k4 = jax.random.split(k1)
    logits2 = jax.random.normal(k3, (B2, V2), dtype=jnp.bfloat16)
    target2 = jax.random.randint(k4, (B2,), 0, V2, dtype=jnp.int32)
    target2 = target2.at[0].set(ignore_index)

    loss2, valid2 = label_smoothing_loss(
        logits2, target2,
        label_smoothing=label_smoothing, tgt_vocab_size=V2,
        ignore_index=ignore_index, reduction='none', tile_v_cap=128)
    loss2 = jax.block_until_ready(loss2)
    ref2 = _reference(logits2.astype(jnp.float32), target2,
                      label_smoothing=label_smoothing,
                      tgt_vocab_size=V2, ignore_index=ignore_index)
    assert jnp.allclose(loss2, ref2, atol=1e-3, rtol=1e-3), (loss2, ref2)

    # --- Test 3: ragged vocab (V % 128 != 0), multi-tile + tail-mask path ---
    B3, V3 = 6, 500
    k5, k6 = jax.random.split(k3)
    logits3 = jax.random.normal(k5, (B3, V3), dtype=jnp.float32)
    target3 = jax.random.randint(k6, (B3,), 0, V3, dtype=jnp.int32)
    target3 = target3.at[2].set(ignore_index)

    loss3, valid3 = label_smoothing_loss(
        logits3, target3,
        label_smoothing=label_smoothing, tgt_vocab_size=V3,
        ignore_index=ignore_index, reduction='none', tile_v_cap=128)
    loss3 = jax.block_until_ready(loss3)
    ref3 = _reference(logits3, target3, label_smoothing=label_smoothing,
                      tgt_vocab_size=V3, ignore_index=ignore_index)
    assert jnp.allclose(loss3, ref3, atol=1e-4, rtol=1e-4), (loss3, ref3)

    print("KERNEL_OK")
</pallas_src>

<mosaic_0001>
module attributes {stable_mosaic.version = 11 : i64} {
  func.func @_label_smoothing_kernel(%arg0: i32, %arg1: i32, %arg2: memref<8x512xf32, #tpu.memory_space<vmem>>, %arg3: memref<8x1xi32, #tpu.memory_space<vmem>>, %arg4: memref<8x1xf32, #tpu.memory_space<vmem>>, %arg5: memref<8x1xf32, #tpu.memory_space<vmem>>, %arg6: memref<8x1xf32, #tpu.memory_space<vmem>>, %arg7: memref<8x1xf32, #tpu.memory_space<vmem>>, %arg8: memref<8x1xf32, #tpu.memory_space<vmem>>) attributes {dimension_semantics = [#tpu.dimension_semantics<parallel>, #tpu.dimension_semantics<arbitrary>], iteration_bounds = array<i64: 1, 1>, scalar_prefetch = 0 : i64, scratch_operands = 3 : i64, tpu.core_type = #tpu.core_type<tc>, window_params = [{transform_indices = @transform_0, window_bounds = array<i64: 8, 512>}, {transform_indices = @transform_1, window_bounds = array<i64: 8, 1>}, {transform_indices = @transform_2, window_bounds = array<i64: 8, 1>}, {transform_indices = @transform_3, window_bounds = array<i64: 8, 1>}]} {
    %c0 = arith.constant 0 : index
    %c0_0 = arith.constant 0 : index
    %0 = vector.load %arg2[%c0, %c0_0] : memref<8x512xf32, #tpu.memory_space<vmem>>, vector<8x512xf32>
    %cst = arith.constant dense<0xFF800000> : vector<8xf32>
    %1 = vector.multi_reduction <maximumf>, %0, %cst [1] : vector<8x512xf32> to vector<8xf32>
    %2 = vector.shape_cast %1 : vector<8xf32> to vector<8x1xf32>
    %cst_1 = arith.constant dense<0.000000e+00> : vector<8xf32>
    %3 = vector.multi_reduction <add>, %0, %cst_1 [1] : vector<8x512xf32> to vector<8xf32>
    %4 = vector.shape_cast %3 : vector<8xf32> to vector<8x1xf32>
    %5 = vector.broadcast %2 : vector<8x1xf32> to vector<8x512xf32>
    %6 = arith.subf %0, %5 : vector<8x512xf32>
    %7 = math.exp %6 : vector<8x512xf32>
    %cst_2 = arith.constant dense<0.000000e+00> : vector<8xf32>
    %8 = vector.multi_reduction <add>, %7, %cst_2 [1] : vector<8x512xf32> to vector<8xf32>
    %9 = vector.shape_cast %8 : vector<8xf32> to vector<8x1xf32>
    %10 = math.log %9 : vector<8x1xf32>
    %11 = arith.addf %10, %2 : vector<8x1xf32>
    %c0_3 = arith.constant 0 : index
    %c0_4 = arith.constant 0 : index
    %12 = vector.load %arg3[%c0_3, %c0_4] : memref<8x1xi32, #tpu.memory_space<vmem>>, vector<8x1xi32>
    %c0_5 = arith.constant 0 : index
    %c0_6 = arith.constant 0 : index
    %13 = vector.load %arg4[%c0_5, %c0_6] : memref<8x1xf32, #tpu.memory_space<vmem>>, vector<8x1xf32>
    %14 = arith.subf %13, %11 : vector<8x1xf32>
    %cst_7 = arith.constant 5.120000e+02 : f32
    %15 = vector.broadcast %cst_7 : f32 to vector<8x1xf32>
    %16 = arith.mulf %15, %11 : vector<8x1xf32>
    %17 = arith.subf %4, %16 : vector<8x1xf32>
    %cst_8 = arith.constant 1.95694724E-4 : f32
    %18 = vector.broadcast %cst_8 : f32 to vector<8x1xf32>
    %19 = arith.mulf %18, %17 : vector<8x1xf32>
    %cst_9 = arith.constant -0.948719918 : f32
    %20 = vector.broadcast %cst_9 : f32 to vector<8x1xf32>
    %21 = arith.subf %20, %19 : vector<8x1xf32>
    %cst_10 = arith.constant 0.899804294 : f32
    %22 = vector.broadcast %cst_10 : f32 to vector<8x1xf32>
    %23 = arith.mulf %22, %14 : vector<8x1xf32>
    %24 = arith.subf %21, %23 : vector<8x1xf32>
    %c-100_i32 = arith.constant -100 : i32
    %25 = vector.broadcast %c-100_i32 : i32 to vector<8x1xi32>
    %26 = arith.cmpi ne, %12, %25 : vector<8x1xi32>
    %cst_11 = arith.constant 0.000000e+00 : f32
    %27 = vector.broadcast %cst_11 : f32 to vector<8x1xf32>
    %28 = arith.select %26, %24, %27 : vector<8x1xi1>, vector<8x1xf32>
    %c0_12 = arith.constant 0 : index
    %c0_13 = arith.constant 0 : index
    %29 = vector.load %arg5[%c0_12, %c0_13] : memref<8x1xf32, #tpu.memory_space<vmem>>, vector<8x1xf32>
    tpu.vector_store %arg5[%c0_12, %c0_13], %28 {strides = array<i32>} : memref<8x1xf32, #tpu.memory_space<vmem>>, vector<8x1xf32>,
    return
  }
  func.func @transform_0(%arg0: i32, %arg1: i32) -> (i32, i32) {
    %c0_i32 = arith.constant 0 : i32
    return %arg0, %arg1 : i32, i32
  }
  func.func @transform_1(%arg0: i32, %arg1: i32) -> (i32, i32) {
    %c0_i32 = arith.constant 0 : i32
    %c0_i32_0 = arith.constant 0 : i32
    return %arg0, %c0_i32 : i32, i32
  }
  func.func @transform_2(%arg0: i32, %arg1: i32) -> (i32, i32) {
    %c0_i32 = arith.constant 0 : i32
    %c0_i32_0 = arith.constant 0 : i32
    return %arg0, %c0_i32 : i32, i32
  }
  func.func @transform_3(%arg0: i32, %arg1: i32) -> (i32, i32) {
    %c0_i32 = arith.constant 0 : i32
    %c0_i32_0 = arith.constant 0 : i32
    return %arg0, %c0_i32 : i32, i32
  }
}

</mosaic_0001>

<bundles_post_ra>
// kernel: tpu_custom_call.1
= control target key start
LH: loop header
LB: loop body
LE: loop exit
PB: predicated region body
PF: predicated region fallthrough
CT: control target
= control target key end

     0   :  { %8 = vsyncpa [#allocation6], 0  ;;  %s111_s12 = smov [#allocation5]   ;;  %s144_s0 = inlined_call_operand.hbm [shape: f32[8,512], index: 0, kind: input, shape index: {}]   ;;  %s145_s1 = inlined_call_operand.vmem [shape: s32[8,1], index: 1, kind: input, shape index: {}]   ;;  %s146_s2 = inlined_call_operand.vmem [shape: f32[8,1], index: 2, kind: input, shape index: {}]   ;;  %s147_s3 = inlined_call_operand.vmem [shape: f32[8,1], index: 3, kind: output, shape index: {}]  }
   0x1   :  { %s15_s13 = sshll.u32 %s111_s12, 4  ;;  %s16_s13 = int_to_ptr.vmem [resolvable:$true] %s15_s13 }
   0x2   :  { %s97_s14 = scalar_lea.vmem %s16_s13, 512  ;;  %p102_p1 = scmp.lt.s32.totalorder %s16_s13, %s16_s13 }
   0x3   :  { %p98_p0 = scmp.ne.s32.totalorder %s16_s13, %s97_s14  ;;  %p103_p2 = scmp.lt.s32.totalorder %s97_s14, %s97_s14 }
   0x5   :  { %p104_p3 = por %p103_p2, %p102_p1 }
   0x7   :  { %p105_p4 = pnand %p104_p3, %p98_p0 }
   0x9   :  { %108 = shalt.err (!%p105_p4)
}
   0xa   :  { %18 = dma.hbm_to_vmem [thread:$0]  %s144_s0, 512, %s16_s13, [#allocation6]  }
   0xb   :  { %109 = dma.done.wait [#allocation6], 512  }
   0xc   :  { %110 = vsyncadd [#allocation6], 4294966784  ;;  %v26_v0 = vld [vmem:[#allocation5] sm:$0xff]  ;;  %v27_v1 = vld [vmem:[#allocation5 + $0x8] sm:$0xff]  ;;  %vm71_vm1 = vcmask 7168  }
   0xd   :  { %v28_v2 = vld [vmem:[#allocation5 + $0x10] sm:$0xff]  ;;  %v29_v3 = vld [vmem:[#allocation5 + $0x18] sm:$0xff]  ;;  %v30_v4 = vmax.f32 %v26_v0, %v27_v1  ;;  %v35_v7 = vadd.f32 %v27_v1, %v26_v0  ;;  %v61_v30 = vld [vmem:[%s146_s2] sm:$0xff] }
   0xe   :  { %v31_v5 = vmax.f32 %v28_v2, %v29_v3  ;;  %v60_v35 = vld [vmem:[%s145_s1] sm:$0xff] }
   0xf   :  { %v36_v8 = vadd.f32 %v35_v7, %v28_v2  ;;  %vm69_vm0 = vcmp.ne.s32.totalorder %v60_v35, 4294967196 }
  0x10   :  { %v32_v6 = vmax.f32 %v30_v4, %v31_v5 }
  0x11   :  { %v37_v9 = vadd.f32 %v36_v8, %v29_v3 }
  0x12   :  { %33 = vmax.xlane.f32.xlu0 %v32_v6 }
  0x13   :  { %38 = vadd.xlane.f32.xlu1 %v37_v9 }
  0x9b   :  { %v34_v10 = vpop.xlane.xlu0 %33 }
  0x9c   :  { %v40_v11 = vsub.f32 %v26_v0, %v34_v10  ;;  %v41_v12 = vsub.f32 %v27_v1, %v34_v10  ;;  %v42_v13 = vsub.f32 %v28_v2, %v34_v10  ;;  %v43_v14 = vsub.f32 %v29_v3, %v34_v10  ;;  %v39_v31 = vpop.xlane.xlu1 %38 }
  0x9e   :  { %v44_v15 = vmul.f32 1.442695, %v40_v11  ;;  %v46_v16 = vmul.f32 1.442695, %v41_v12  ;;  %v48_v17 = vmul.f32 1.442695, %v42_v13 }
  0x9f   :  { %v50_v18 = vmul.f32 1.442695, %v43_v14 }
  0xa0   :  { %79 = vpow2.f32 %v44_v15 }
  0xa1   :  { %81 = vpow2.f32 %v46_v16 }
  0xa2   :  { %83 = vpow2.f32 %v48_v17 }
  0xa3   :  { %85 = vpow2.f32 %v50_v18 }
  0xad   :  { %v80_v19 = vpop.eup %79 }
  0xae   :  { %v82_v20 = vpop.eup %81 }
  0xaf   :  { %v52_v21 = vadd.f32 %v82_v20, %v80_v19  ;;  %v84_v22 = vpop.eup %83 }
  0xb0   :  { %v86_v24 = vpop.eup %85 }
  0xb1   :  { %v53_v23 = vadd.f32 %v84_v22, %v52_v21 }
  0xb3   :  { %v54_v25 = vadd.f32 %v86_v24, %v53_v23 }
  0xb5   :  { %55 = vadd.xlane.f32.xlu0 %v54_v25 }
 0x13e   :  { %v56_v26 = vpop.xlane.xlu0 %55 }
 0x13f   :  { %87 = vlog2.f32 %v56_v26 }
 0x14c   :  { %v88_v27 = vpop.eup %87 }
 0x14d   :  { %v58_v28 = vmul.f32 0.6931472, %v88_v27 }
 0x14f   :  { %v59_v29 = vadd.f32 %v58_v28, %v34_v10 }
 0x151   :  { %v63_v32 = vmul.f32 512.0, %v59_v29  ;;  %v62_v33 = vsub.f32 %v61_v30, %v59_v29 }
 0x153   :  { %v64_v34 = vsub.f32 %v39_v31, %v63_v32  ;;  %v67_v38 = vmul.f32 0.8998043, %v62_v33 }
 0x155   :  { %v65_v36 = vmul.f32 0.00019569472, %v64_v34 }
 0x157   :  { %v66_v37 = vsub.f32 -0.9487199, %v65_v36 }
 0x159   :  { %v68_v39 = vsub.f32 %v66_v37, %v67_v38 }
 0x15b   :  { %v70_v40 = vsel %vm69_vm0, %v68_v39, 0.0 }
 0x15c   :  { %72 = vst.msk [vmem:[%s147_s3] sm:$0xff] %vm71_vm1, %v70_v40 }
 0x15d   :  { %77 = vsyncpa [#allocation6], 1 }

</bundles_post_ra>
